<compile_context>
chip_gen: v5e
topology: v5e:2x2
jax: 0.10.0
libtpu: 0.0.40
codegen_flags: <defaults>
</compile_context>

<pallas_src>
import functools

import jax
import jax.numpy as jnp
from jax.experimental import pallas as pl
from jax.experimental.pallas import tpu as pltpu

N_LAYERS = 4


def _encoder_z_kernel(z_ref,
                      w1lv_ref, b1lv_ref,
                      w2_ref, b2_ref,
                      w3_ref, b3_ref,
                      w4_ref, b4_ref,
                      mu_ref, lv_ref,
                      *, hidden_pad):
    """Fused MLP (mu head) + linear+clamp (logvar head) for one batch tile.

    w1lv columns are [w1 | zero-pad to hidden_pad | wlv], so the split below lands
    on a 128-lane boundary whenever hidden_pad % 128 == 0.
    """
    cd = w1lv_ref.dtype                                            # compute dtype
    z = z_ref[...].astype(cd)                                      # (TB, D)

    # Fused layer 1 + logvar head: z @ [w1 | pad | wlv] -> (TB, Hp + D), bias in f32.
    h0 = jnp.dot(z, w1lv_ref[...], preferred_element_type=jnp.float32) + b1lv_ref[...]
    h = jnp.maximum(h0[:, :hidden_pad], 0.0)                       # mu path  (TB, Hp)
    lv_ref[...] = jnp.minimum(h0[:, hidden_pad:], 5.0).astype(lv_ref.dtype)

    # TODO(synk): Dropout(p=0.1) between mu layers is identity in eval mode; omitted.
    h = jnp.maximum(
        jnp.dot(h.astype(cd), w2_ref[...], preferred_element_type=jnp.float32)
        + b2_ref[...], 0.0)
    h = jnp.maximum(
        jnp.dot(h.astype(cd), w3_ref[...], preferred_element_type=jnp.float32)
        + b3_ref[...], 0.0)
    mu_ref[...] = (
        jnp.dot(h.astype(cd), w4_ref[...], preferred_element_type=jnp.float32)
        + b4_ref[...]).astype(mu_ref.dtype)


def _choose_tile_b(B, requested, *, even_steps=True):
    """Batch tile: keep the last tile nearly full (minimal padding), multiple of 8
    when the grid has >1 step, and prefer >=2 (even) steps so both v7x TCs get work."""
    requested = max(8, int(requested))
    steps = pl.cdiv(B, requested)
    if steps <= 1:
        if even_steps and B >= 16:
            steps = 2
        else:
            return B                      # single full-array block: zero padding
    elif even_steps and steps % 2:
        steps += 1
    per_step = -(-B // steps)             # ceil(B / steps): balanced tiles
    return -(-per_step // 8) * 8          # round up to the 8-row sublane multiple


def mlc_encoder_z_forward(z, params, *, tile_b=1024, compute_dtype=jnp.bfloat16,
                          out_dtype=jnp.float32, core_parallel=False):
    """z: (B, in_dim).  Returns dict(mu=(B,D), logvar=(B,D)) in out_dtype."""
    B, D = z.shape
    H = params["w1"].shape[1]                     # hidden = 2 * in_dim
    Hp = pl.cdiv(H, 128) * 128                    # lane-aligned split point
    pad_h = Hp - H

    f32 = jnp.float32
    cd = compute_dtype

    # --- Pack parameters once (host side). Weights -> compute dtype, biases stay f32.
    w1 = params["w1"].astype(cd)
    if pad_h:
        w1 = jnp.pad(w1, ((0, 0), (0, pad_h)))
    w1lv = jnp.concatenate([w1, params["wlv"].astype(cd)], axis=1)       # (D, Hp+D)
    b1 = params["b1"].reshape(1, -1).astype(f32)
    if pad_h:
        b1 = jnp.pad(b1, ((0, 0), (0, pad_h)))
    b1lv = jnp.concatenate([b1, params["blv"].reshape(1, -1).astype(f32)], axis=1)
    w2 = params["w2"].astype(cd)
    if pad_h:
        w2 = jnp.pad(w2, ((0, pad_h), (0, 0)))                           # (Hp, H)
    w3 = params["w3"].astype(cd)
    w4 = params["w4"].astype(cd)
    b2, b3, b4 = (params[k].reshape(1, -1).astype(f32) for k in ("b2", "b3", "b4"))

    # --- VMEM budgeting against the physical capacity of this generation.
    try:
        info = pltpu.get_tpu_info()
        phys_vmem = int(getattr(info, "vmem_capacity_bytes", 0)) or (64 << 20)
    except Exception:                              # noqa: BLE001 - conservative default
        phys_vmem = 64 << 20                       # v7x-sized fallback
    budget = int(0.75 * phys_vmem)

    zbytes = z.dtype.itemsize
    obytes = jnp.dtype(out_dtype).itemsize
    cbytes = jnp.dtype(cd).itemsize
    param_bytes = ((D * (Hp + D) + Hp * H + H * H + H * D) * cbytes
                   + (Hp + 2 * D + 2 * H) * 4)

    def _io_bytes(tb):
        return (2 * tb * D * zbytes                # double-buffered z tile
                + 2 * 2 * tb * D * obytes          # mu + logvar tiles, double-buffered
                + tb * (Hp + D + 2 * H) * 4)       # live f32 activations (rough)

    tb = _choose_tile_b(B, tile_b)
    while tb > 8 and 2 * param_bytes + _io_bytes(tb) > budget:
        smaller = _choose_tile_b(B, max(8, tb // 2))
        if smaller >= tb:
            break
        tb = smaller

    steps = pl.cdiv(B, tb)
    Bp = steps * tb
    z_p = z if Bp == B else jnp.pad(z, ((0, Bp - B), (0, 0)))   # no wrapper dtype cast

    dims = (pltpu.CORE_PARALLEL,) if core_parallel else ("parallel",)

    flops = 2 * Bp * (D * (Hp + D) + Hp * H + H * H + H * D)
    bytes_accessed = Bp * D * zbytes + param_bytes + 2 * Bp * D * obytes
    cost = pl.CostEstimate(flops=flops, transcendentals=0,
                           bytes_accessed=bytes_accessed)

    def _run(single_buffer_weights):
        def w_spec(shape):
            idx = lambda *_: (0,) * len(shape)     # grid-invariant (resident) block
            if single_buffer_weights:
                return pl.BlockSpec(shape, idx, pipeline_mode=pl.Buffered(1))
            return pl.BlockSpec(shape, idx)

        in_specs = [
            pl.BlockSpec((tb, D), lambda i: (i, 0)),
            w_spec((D, Hp + D)), w_spec((1, Hp + D)),   # fused layer 1 + logvar head
            w_spec((Hp, H)),     w_spec((1, H)),        # layer 2 (K rows zero-padded)
            w_spec((H, H)),      w_spec((1, H)),        # layer 3
            w_spec((H, D)),      w_spec((1, D)),        # layer 4
        ]
        out_specs = [pl.BlockSpec((tb, D), lambda i: (i, 0)),   # mu
                     pl.BlockSpec((tb, D), lambda i: (i, 0))]   # logvar

        weight_buf = 1 if single_buffer_weights else 2
        footprint = weight_buf * param_bytes + _io_bytes(tb)
        vmem_limit = int(min(max(int(1.5 * footprint) + (2 << 20), 16 << 20), budget))

        return pl.pallas_call(
            functools.partial(_encoder_z_kernel, hidden_pad=Hp),
            out_shape=(jax.ShapeDtypeStruct((Bp, D), out_dtype),
                       jax.ShapeDtypeStruct((Bp, D), out_dtype)),
            grid_spec=pltpu.PrefetchScalarGridSpec(
                num_scalar_prefetch=0,
                grid=(steps,),
                in_specs=in_specs,
                out_specs=out_specs),
            compiler_params=pltpu.CompilerParams(
                dimension_semantics=dims,
                vmem_limit_bytes=vmem_limit),
            cost_estimate=cost,
        )(z_p, w1lv, b1lv, w2, b2, w3, b3, w4, b4)

    try:
        mu_p, lv_p = _run(True)                    # single-buffered resident weights
    except Exception:                              # noqa: BLE001
        mu_p, lv_p = _run(False)                   # pipeline_mode unsupported -> default

    if Bp != B:                                    # only the ragged rows get sliced
        mu_p, lv_p = mu_p[:B], lv_p[:B]
    return {"mu": mu_p, "logvar": lv_p}


def init_params(key, in_dim):
    """Deterministic synthetic parameters (xavier-uniform-ish weights, zero bias)."""
    hid = in_dim * 2
    shapes = {
        "w1": (in_dim, hid), "b1": (1, hid),
        "w2": (hid, hid),    "b2": (1, hid),
        "w3": (hid, hid),    "b3": (1, hid),
        "w4": (hid, in_dim), "b4": (1, in_dim),
        "wlv": (in_dim, in_dim), "blv": (1, in_dim),
    }
    params = {}
    keys = jax.random.split(key, len(shapes))
    for k, (name, shape) in zip(keys, sorted(shapes.items())):
        if name.startswith("w"):
            fan_in, fan_out = shape
            limit = (6.0 / (fan_in + fan_out)) ** 0.5
            params[name] = jax.random.uniform(
                k, shape, jnp.float32, minval=-limit, maxval=limit)
        else:
            params[name] = jnp.zeros(shape, jnp.float32)
    return params


def reference_forward(z, params, compute_dtype=jnp.float32):
    """Plain-JAX reference with the same operand-dtype policy as the kernel."""
    cd = compute_dtype

    def lin(x, w, b):
        return jnp.dot(x.astype(cd), w.astype(cd),
                       preferred_element_type=jnp.float32) + b.reshape(1, -1)

    h = jnp.maximum(lin(z, params["w1"], params["b1"]), 0.0)
    h = jnp.maximum(lin(h, params["w2"], params["b2"]), 0.0)
    h = jnp.maximum(lin(h, params["w3"], params["b3"]), 0.0)
    mu = lin(h, params["w4"], params["b4"])
    logvar = jnp.minimum(lin(z, params["wlv"], params["blv"]), 5.0)
    return {"mu": mu, "logvar": logvar}


if __name__ == "__main__":
    B, IN_DIM = 8, 32            # small shapes: batch=8, in_dim=32 (hidden=64)
    key = jax.random.PRNGKey(0)
    k_z1, k_z2, k_p = jax.random.split(key, 3)

    z = jax.random.normal(k_z1, (B, IN_DIM), jnp.float32)
    params = init_params(k_p, IN_DIM)

    # Default path: bf16 matmul operands, f32 accumulation, f32 outputs.
    out = mlc_encoder_z_forward(z, params)
    jax.block_until_ready(out)
    assert out["mu"].shape == (B, IN_DIM) and out["logvar"].shape == (B, IN_DIM)
    ref_bf16 = reference_forward(z, params, compute_dtype=jnp.bfloat16)
    assert jnp.allclose(out["mu"], ref_bf16["mu"], atol=1e-3, rtol=1e-3)
    assert jnp.allclose(out["logvar"], ref_bf16["logvar"], atol=1e-3, rtol=1e-3)
    # Loose accuracy check vs f32 ground truth (bf16 operands, 4 fused layers).
    ref_f32 = reference_forward(z, params, compute_dtype=jnp.float32)
    assert jnp.allclose(out["mu"], ref_f32["mu"], atol=7.5e-2, rtol=7.5e-2)
    assert jnp.allclose(out["logvar"], ref_f32["logvar"], atol=7.5e-2, rtol=7.5e-2)

    # Full-f32 path vs f32 reference (tight tolerance).
    out32 = mlc_encoder_z_forward(z, params, compute_dtype=jnp.float32)
    jax.block_until_ready(out32)
    assert jnp.allclose(out32["mu"], ref_f32["mu"], atol=1e-5, rtol=1e-5)
    assert jnp.allclose(out32["logvar"], ref_f32["logvar"], atol=1e-5, rtol=1e-5)

    # Ragged batch -> multi-step grid with minimal padding and output row-slice.
    B2 = 20
    z2 = jax.random.normal(k_z2, (B2, IN_DIM), jnp.float32)
    out2 = mlc_encoder_z_forward(z2, params, tile_b=8, compute_dtype=jnp.float32)
    jax.block_until_ready(out2)
    ref2 = reference_forward(z2, params, compute_dtype=jnp.float32)
    assert out2["mu"].shape == (B2, IN_DIM) and out2["logvar"].shape == (B2, IN_DIM)
    assert jnp.allclose(out2["mu"], ref2["mu"], atol=1e-5, rtol=1e-5)
    assert jnp.allclose(out2["logvar"], ref2["logvar"], atol=1e-5, rtol=1e-5)

    print("KERNEL_OK")
</pallas_src>

<mosaic_0001>
module attributes {stable_mosaic.version = 11 : i64} {
  func.func @_encoder_z_kernel(%arg0: i32, %arg1: memref<8x32xf32, #tpu.memory_space<vmem>>, %arg2: memref<32x160xbf16, #tpu.memory_space<vmem>>, %arg3: memref<1x160xf32, #tpu.memory_space<vmem>>, %arg4: memref<128x64xbf16, #tpu.memory_space<vmem>>, %arg5: memref<1x64xf32, #tpu.memory_space<vmem>>, %arg6: memref<64x64xbf16, #tpu.memory_space<vmem>>, %arg7: memref<1x64xf32, #tpu.memory_space<vmem>>, %arg8: memref<64x32xbf16, #tpu.memory_space<vmem>>, %arg9: memref<1x32xf32, #tpu.memory_space<vmem>>, %arg10: memref<8x32xf32, #tpu.memory_space<vmem>>, %arg11: memref<8x32xf32, #tpu.memory_space<vmem>>) attributes {dimension_semantics = [#tpu.dimension_semantics<parallel>], iteration_bounds = array<i64: 1>, scalar_prefetch = 0 : i64, scratch_operands = 0 : i64, tpu.core_type = #tpu.core_type<tc>, window_params = [{transform_indices = @transform_0, window_bounds = array<i64: 8, 32>}, {pipeline_mode = #tpu.pipeline_mode<synchronous>, transform_indices = @transform_1, window_bounds = array<i64: 32, 160>}, {pipeline_mode = #tpu.pipeline_mode<synchronous>, transform_indices = @transform_2, window_bounds = array<i64: 1, 160>}, {pipeline_mode = #tpu.pipeline_mode<synchronous>, transform_indices = @transform_3, window_bounds = array<i64: 128, 64>}, {pipeline_mode = #tpu.pipeline_mode<synchronous>, transform_indices = @transform_4, window_bounds = array<i64: 1, 64>}, {pipeline_mode = #tpu.pipeline_mode<synchronous>, transform_indices = @transform_5, window_bounds = array<i64: 64, 64>}, {pipeline_mode = #tpu.pipeline_mode<synchronous>, transform_indices = @transform_6, window_bounds = array<i64: 1, 64>}, {pipeline_mode = #tpu.pipeline_mode<synchronous>, transform_indices = @transform_7, window_bounds = array<i64: 64, 32>}, {pipeline_mode = #tpu.pipeline_mode<synchronous>, transform_indices = @transform_8, window_bounds = array<i64: 1, 32>}, {transform_indices = @transform_9, window_bounds = array<i64: 8, 32>}, {transform_indices = @transform_10, window_bounds = array<i64: 8, 32>}]} {
    %c0 = arith.constant 0 : index
    %c0_0 = arith.constant 0 : index
    %0 = vector.load %arg1[%c0, %c0_0] : memref<8x32xf32, #tpu.memory_space<vmem>>, vector<8x32xf32>
    %1 = arith.truncf %0 : vector<8x32xf32> to vector<8x32xbf16>
    %c0_1 = arith.constant 0 : index
    %c0_2 = arith.constant 0 : index
    %2 = vector.load %arg2[%c0_1, %c0_2] : memref<32x160xbf16, #tpu.memory_space<vmem>>, vector<32x160xbf16>
    %cst = arith.constant dense<0.000000e+00> : vector<8x160xf32>
    %3 = tpu.matmul %1, %2, %cst {dimension_numbers = #tpu.dot_dimension_numbers<[1], [0], [0], [1], [0, 0, 1, 1], [], []>} : vector<8x32xbf16>, vector<32x160xbf16>, vector<8x160xf32> -> vector<8x160xf32>
    %c0_3 = arith.constant 0 : index
    %c0_4 = arith.constant 0 : index
    %4 = vector.load %arg3[%c0_3, %c0_4] : memref<1x160xf32, #tpu.memory_space<vmem>>, vector<1x160xf32>
    %5 = vector.broadcast %4 : vector<1x160xf32> to vector<8x160xf32>
    %6 = arith.addf %3, %5 : vector<8x160xf32>
    %7 = vector.extract_strided_slice %6 {offsets = [0, 0], sizes = [8, 128], strides = [1, 1]} : vector<8x160xf32> to vector<8x128xf32>
    %cst_5 = arith.constant 0.000000e+00 : f32
    %8 = vector.broadcast %cst_5 : f32 to vector<8x128xf32>
    %9 = arith.maximumf %7, %8 : vector<8x128xf32>
    %10 = vector.extract_strided_slice %6 {offsets = [0, 128], sizes = [8, 32], strides = [1, 1]} : vector<8x160xf32> to vector<8x32xf32>
    %cst_6 = arith.constant 5.000000e+00 : f32
    %11 = vector.broadcast %cst_6 : f32 to vector<8x32xf32>
    %12 = arith.minimumf %10, %11 : vector<8x32xf32>
    %c0_7 = arith.constant 0 : index
    %c0_8 = arith.constant 0 : index
    %13 = vector.load %arg11[%c0_7, %c0_8] : memref<8x32xf32, #tpu.memory_space<vmem>>, vector<8x32xf32>
    tpu.vector_store %arg11[%c0_7, %c0_8], %12 {strides = array<i32>} : memref<8x32xf32, #tpu.memory_space<vmem>>, vector<8x32xf32>,
    %14 = arith.truncf %9 : vector<8x128xf32> to vector<8x128xbf16>
    %c0_9 = arith.constant 0 : index
    %c0_10 = arith.constant 0 : index
    %15 = vector.load %arg4[%c0_9, %c0_10] : memref<128x64xbf16, #tpu.memory_space<vmem>>, vector<128x64xbf16>
    %cst_11 = arith.constant dense<0.000000e+00> : vector<8x64xf32>
    %16 = tpu.matmul %14, %15, %cst_11 {dimension_numbers = #tpu.dot_dimension_numbers<[1], [0], [0], [1], [0, 0, 1, 1], [], []>} : vector<8x128xbf16>, vector<128x64xbf16>, vector<8x64xf32> -> vector<8x64xf32>
    %c0_12 = arith.constant 0 : index
    %c0_13 = arith.constant 0 : index
    %17 = vector.load %arg5[%c0_12, %c0_13] : memref<1x64xf32, #tpu.memory_space<vmem>>, vector<1x64xf32>
    %18 = vector.broadcast %17 : vector<1x64xf32> to vector<8x64xf32>
    %19 = arith.addf %16, %18 : vector<8x64xf32>
    %cst_14 = arith.constant 0.000000e+00 : f32
    %20 = vector.broadcast %cst_14 : f32 to vector<8x64xf32>
    %21 = arith.maximumf %19, %20 : vector<8x64xf32>
    %22 = arith.truncf %21 : vector<8x64xf32> to vector<8x64xbf16>
    %c0_15 = arith.constant 0 : index
    %c0_16 = arith.constant 0 : index
    %23 = vector.load %arg6[%c0_15, %c0_16] : memref<64x64xbf16, #tpu.memory_space<vmem>>, vector<64x64xbf16>
    %cst_17 = arith.constant dense<0.000000e+00> : vector<8x64xf32>
    %24 = tpu.matmul %22, %23, %cst_17 {dimension_numbers = #tpu.dot_dimension_numbers<[1], [0], [0], [1], [0, 0, 1, 1], [], []>} : vector<8x64xbf16>, vector<64x64xbf16>, vector<8x64xf32> -> vector<8x64xf32>
    %c0_18 = arith.constant 0 : index
    %c0_19 = arith.constant 0 : index
    %25 = vector.load %arg7[%c0_18, %c0_19] : memref<1x64xf32, #tpu.memory_space<vmem>>, vector<1x64xf32>
    %26 = vector.broadcast %25 : vector<1x64xf32> to vector<8x64xf32>
    %27 = arith.addf %24, %26 : vector<8x64xf32>
    %cst_20 = arith.constant 0.000000e+00 : f32
    %28 = vector.broadcast %cst_20 : f32 to vector<8x64xf32>
    %29 = arith.maximumf %27, %28 : vector<8x64xf32>
    %30 = arith.truncf %29 : vector<8x64xf32> to vector<8x64xbf16>
    %c0_21 = arith.constant 0 : index
    %c0_22 = arith.constant 0 : index
    %31 = vector.load %arg8[%c0_21, %c0_22] : memref<64x32xbf16, #tpu.memory_space<vmem>>, vector<64x32xbf16>
    %cst_23 = arith.constant dense<0.000000e+00> : vector<8x32xf32>
    %32 = tpu.matmul %30, %31, %cst_23 {dimension_numbers = #tpu.dot_dimension_numbers<[1], [0], [0], [1], [0, 0, 1, 1], [], []>} : vector<8x64xbf16>, vector<64x32xbf16>, vector<8x32xf32> -> vector<8x32xf32>
    %c0_24 = arith.constant 0 : index
    %c0_25 = arith.constant 0 : index
    %33 = vector.load %arg9[%c0_24, %c0_25] : memref<1x32xf32, #tpu.memory_space<vmem>>, vector<1x32xf32>
    %34 = vector.broadcast %33 : vector<1x32xf32> to vector<8x32xf32>
    %35 = arith.addf %32, %34 : vector<8x32xf32>
    %c0_26 = arith.constant 0 : index
    %c0_27 = arith.constant 0 : index
    %36 = vector.load %arg10[%c0_26, %c0_27] : memref<8x32xf32, #tpu.memory_space<vmem>>, vector<8x32xf32>
    tpu.vector_store %arg10[%c0_26, %c0_27], %35 {strides = array<i32>} : memref<8x32xf32, #tpu.memory_space<vmem>>, vector<8x32xf32>,
    return
  }
  func.func @transform_0(%arg0: i32) -> (i32, i32) {
    %c0_i32 = arith.constant 0 : i32
    %c0_i32_0 = arith.constant 0 : i32
    return %arg0, %c0_i32 : i32, i32
  }
  func.func @transform_1(%arg0: i32) -> (i32, i32) {
    %c0_i32 = arith.constant 0 : i32
    %c0_i32_0 = arith.constant 0 : i32
    %c0_i32_1 = arith.constant 0 : i32
    return %c0_i32, %c0_i32_0 : i32, i32
  }
  func.func @transform_2(%arg0: i32) -> (i32, i32) {
    %c0_i32 = arith.constant 0 : i32
    %c0_i32_0 = arith.constant 0 : i32
    %c0_i32_1 = arith.constant 0 : i32
    return %c0_i32, %c0_i32_0 : i32, i32
  }
  func.func @transform_3(%arg0: i32) -> (i32, i32) {
    %c0_i32 = arith.constant 0 : i32
    %c0_i32_0 = arith.constant 0 : i32
    %c0_i32_1 = arith.constant 0 : i32
    return %c0_i32, %c0_i32_0 : i32, i32
  }
  func.func @transform_4(%arg0: i32) -> (i32, i32) {
    %c0_i32 = arith.constant 0 : i32
    %c0_i32_0 = arith.constant 0 : i32
    %c0_i32_1 = arith.constant 0 : i32
    return %c0_i32, %c0_i32_0 : i32, i32
  }
  func.func @transform_5(%arg0: i32) -> (i32, i32) {
    %c0_i32 = arith.constant 0 : i32
    %c0_i32_0 = arith.constant 0 : i32
    %c0_i32_1 = arith.constant 0 : i32
    return %c0_i32, %c0_i32_0 : i32, i32
  }
  func.func @transform_6(%arg0: i32) -> (i32, i32) {
    %c0_i32 = arith.constant 0 : i32
    %c0_i32_0 = arith.constant 0 : i32
    %c0_i32_1 = arith.constant 0 : i32
    return %c0_i32, %c0_i32_0 : i32, i32
  }
  func.func @transform_7(%arg0: i32) -> (i32, i32) {
    %c0_i32 = arith.constant 0 : i32
    %c0_i32_0 = arith.constant 0 : i32
    %c0_i32_1 = arith.constant 0 : i32
    return %c0_i32, %c0_i32_0 : i32, i32
  }
  func.func @transform_8(%arg0: i32) -> (i32, i32) {
    %c0_i32 = arith.constant 0 : i32
    %c0_i32_0 = arith.constant 0 : i32
    %c0_i32_1 = arith.constant 0 : i32
    return %c0_i32, %c0_i32_0 : i32, i32
  }
  func.func @transform_9(%arg0: i32) -> (i32, i32) {
    %c0_i32 = arith.constant 0 : i32
    %c0_i32_0 = arith.constant 0 : i32
    return %arg0, %c0_i32 : i32, i32
  }
  func.func @transform_10(%arg0: i32) -> (i32, i32) {
    %c0_i32 = arith.constant 0 : i32
    %c0_i32_0 = arith.constant 0 : i32
    return %arg0, %c0_i32 : i32, i32
  }
}

module attributes {stable_mosaic.version = 11 : i64} {
  func.func @_encoder_z_kernel(%arg0: i32, %arg1: memref<8x32xf32, #tpu.memory_space<vmem>>, %arg2: memref<32x160xbf16, #tpu.memory_space<vmem>>, %arg3: memref<1x160xf32, #tpu.memory_space<vmem>>, %arg4: memref<128x64xbf16, #tpu.memory_space<vmem>>, %arg5: memref<1x64xf32, #tpu.memory_space<vmem>>, %arg6: memref<64x64xbf16, #tpu.memory_space<vmem>>, %arg7: memref<1x64xf32, #tpu.memory_space<vmem>>, %arg8: memref<64x32xbf16, #tpu.memory_space<vmem>>, %arg9: memref<1x32xf32, #tpu.memory_space<vmem>>, %arg10: memref<8x32xf32, #tpu.memory_space<vmem>>, %arg11: memref<8x32xf32, #tpu.memory_space<vmem>>) attributes {dimension_semantics = [#tpu.dimension_semantics<parallel>], iteration_bounds = array<i64: 1>, scalar_prefetch = 0 : i64, scratch_operands = 0 : i64, tpu.core_type = #tpu.core_type<tc>, window_params = [{transform_indices = @transform_0, window_bounds = array<i64: 8, 32>}, {pipeline_mode = #tpu.pipeline_mode<synchronous>, transform_indices = @transform_1, window_bounds = array<i64: 32, 160>}, {pipeline_mode = #tpu.pipeline_mode<synchronous>, transform_indices = @transform_2, window_bounds = array<i64: 1, 160>}, {pipeline_mode = #tpu.pipeline_mode<synchronous>, transform_indices = @transform_3, window_bounds = array<i64: 128, 64>}, {pipeline_mode = #tpu.pipeline_mode<synchronous>, transform_indices = @transform_4, window_bounds = array<i64: 1, 64>}, {pipeline_mode = #tpu.pipeline_mode<synchronous>, transform_indices = @transform_5, window_bounds = array<i64: 64, 64>}, {pipeline_mode = #tpu.pipeline_mode<synchronous>, transform_indices = @transform_6, window_bounds = array<i64: 1, 64>}, {pipeline_mode = #tpu.pipeline_mode<synchronous>, transform_indices = @transform_7, window_bounds = array<i64: 64, 32>}, {pipeline_mode = #tpu.pipeline_mode<synchronous>, transform_indices = @transform_8, window_bounds = array<i64: 1, 32>}, {transform_indices = @transform_9, window_bounds = array<i64: 8, 32>}, {transform_indices = @transform_10, window_bounds = array<i64: 8, 32>}]} {
    %c0 = arith.constant 0 : index
    %c0_0 = arith.constant 0 : index
    %0 = vector.load %arg1[%c0, %c0_0] : memref<8x32xf32, #tpu.memory_space<vmem>>, vector<8x32xf32>
    %1 = arith.truncf %0 : vector<8x32xf32> to vector<8x32xbf16>
    %c0_1 = arith.constant 0 : index
    %c0_2 = arith.constant 0 : index
    %2 = vector.load %arg2[%c0_1, %c0_2] : memref<32x160xbf16, #tpu.memory_space<vmem>>, vector<32x160xbf16>
    %cst = arith.constant dense<0.000000e+00> : vector<8x160xf32>
    %3 = tpu.matmul %1, %2, %cst {dimension_numbers = #tpu.dot_dimension_numbers<[1], [0], [0], [1], [0, 0, 1, 1], [], []>} : vector<8x32xbf16>, vector<32x160xbf16>, vector<8x160xf32> -> vector<8x160xf32>
    %c0_3 = arith.constant 0 : index
    %c0_4 = arith.constant 0 : index
    %4 = vector.load %arg3[%c0_3, %c0_4] : memref<1x160xf32, #tpu.memory_space<vmem>>, vector<1x160xf32>
    %5 = vector.broadcast %4 : vector<1x160xf32> to vector<8x160xf32>
    %6 = arith.addf %3, %5 : vector<8x160xf32>
    %7 = vector.extract_strided_slice %6 {offsets = [0, 0], sizes = [8, 128], strides = [1, 1]} : vector<8x160xf32> to vector<8x128xf32>
    %cst_5 = arith.constant 0.000000e+00 : f32
    %8 = vector.broadcast %cst_5 : f32 to vector<8x128xf32>
    %9 = arith.maximumf %7, %8 : vector<8x128xf32>
    %10 = vector.extract_strided_slice %6 {offsets = [0, 128], sizes = [8, 32], strides = [1, 1]} : vector<8x160xf32> to vector<8x32xf32>
    %cst_6 = arith.constant 5.000000e+00 : f32
    %11 = vector.broadcast %cst_6 : f32 to vector<8x32xf32>
    %12 = arith.minimumf %10, %11 : vector<8x32xf32>
    %c0_7 = arith.constant 0 : index
    %c0_8 = arith.constant 0 : index
    %13 = vector.load %arg11[%c0_7, %c0_8] : memref<8x32xf32, #tpu.memory_space<vmem>>, vector<8x32xf32>
    tpu.vector_store %arg11[%c0_7, %c0_8], %12 {strides = array<i32>} : memref<8x32xf32, #tpu.memory_space<vmem>>, vector<8x32xf32>,
    %14 = arith.truncf %9 : vector<8x128xf32> to vector<8x128xbf16>
    %c0_9 = arith.constant 0 : index
    %c0_10 = arith.constant 0 : index
    %15 = vector.load %arg4[%c0_9, %c0_10] : memref<128x64xbf16, #tpu.memory_space<vmem>>, vector<128x64xbf16>
    %cst_11 = arith.constant dense<0.000000e+00> : vector<8x64xf32>
    %16 = tpu.matmul %14, %15, %cst_11 {dimension_numbers = #tpu.dot_dimension_numbers<[1], [0], [0], [1], [0, 0, 1, 1], [], []>} : vector<8x128xbf16>, vector<128x64xbf16>, vector<8x64xf32> -> vector<8x64xf32>
    %c0_12 = arith.constant 0 : index
    %c0_13 = arith.constant 0 : index
    %17 = vector.load %arg5[%c0_12, %c0_13] : memref<1x64xf32, #tpu.memory_space<vmem>>, vector<1x64xf32>
    %18 = vector.broadcast %17 : vector<1x64xf32> to vector<8x64xf32>
    %19 = arith.addf %16, %18 : vector<8x64xf32>
    %cst_14 = arith.constant 0.000000e+00 : f32
    %20 = vector.broadcast %cst_14 : f32 to vector<8x64xf32>
    %21 = arith.maximumf %19, %20 : vector<8x64xf32>
    %22 = arith.truncf %21 : vector<8x64xf32> to vector<8x64xbf16>
    %c0_15 = arith.constant 0 : index
    %c0_16 = arith.constant 0 : index
    %23 = vector.load %arg6[%c0_15, %c0_16] : memref<64x64xbf16, #tpu.memory_space<vmem>>, vector<64x64xbf16>
    %cst_17 = arith.constant dense<0.000000e+00> : vector<8x64xf32>
    %24 = tpu.matmul %22, %23, %cst_17 {dimension_numbers = #tpu.dot_dimension_numbers<[1], [0], [0], [1], [0, 0, 1, 1], [], []>} : vector<8x64xbf16>, vector<64x64xbf16>, vector<8x64xf32> -> vector<8x64xf32>
    %c0_18 = arith.constant 0 : index
    %c0_19 = arith.constant 0 : index
    %25 = vector.load %arg7[%c0_18, %c0_19] : memref<1x64xf32, #tpu.memory_space<vmem>>, vector<1x64xf32>
    %26 = vector.broadcast %25 : vector<1x64xf32> to vector<8x64xf32>
    %27 = arith.addf %24, %26 : vector<8x64xf32>
    %cst_20 = arith.constant 0.000000e+00 : f32
    %28 = vector.broadcast %cst_20 : f32 to vector<8x64xf32>
    %29 = arith.maximumf %27, %28 : vector<8x64xf32>
    %30 = arith.truncf %29 : vector<8x64xf32> to vector<8x64xbf16>
    %c0_21 = arith.constant 0 : index
    %c0_22 = arith.constant 0 : index
    %31 = vector.load %arg8[%c0_21, %c0_22] : memref<64x32xbf16, #tpu.memory_space<vmem>>, vector<64x32xbf16>
    %cst_23 = arith.constant dense<0.000000e+00> : vector<8x32xf32>
    %32 = tpu.matmul %30, %31, %cst_23 {dimension_numbers = #tpu.dot_dimension_numbers<[1], [0], [0], [1], [0, 0, 1, 1], [], []>} : vector<8x64xbf16>, vector<64x32xbf16>, vector<8x32xf32> -> vector<8x32xf32>
    %c0_24 = arith.constant 0 : index
    %c0_25 = arith.constant 0 : index
    %33 = vector.load %arg9[%c0_24, %c0_25] : memref<1x32xf32, #tpu.memory_space<vmem>>, vector<1x32xf32>
    %34 = vector.broadcast %33 : vector<1x32xf32> to vector<8x32xf32>
    %35 = arith.addf %32, %34 : vector<8x32xf32>
    %c0_26 = arith.constant 0 : index
    %c0_27 = arith.constant 0 : index
    %36 = vector.load %arg10[%c0_26, %c0_27] : memref<8x32xf32, #tpu.memory_space<vmem>>, vector<8x32xf32>
    tpu.vector_store %arg10[%c0_26, %c0_27], %35 {strides = array<i32>} : memref<8x32xf32, #tpu.memory_space<vmem>>, vector<8x32xf32>,
    return
  }
  func.func @transform_0(%arg0: i32) -> (i32, i32) {
    %c0_i32 = arith.constant 0 : i32
    %c0_i32_0 = arith.constant 0 : i32
    return %arg0, %c0_i32 : i32, i32
  }
  func.func @transform_1(%arg0: i32) -> (i32, i32) {
    %c0_i32 = arith.constant 0 : i32
    %c0_i32_0 = arith.constant 0 : i32
    %c0_i32_1 = arith.constant 0 : i32
    return %c0_i32, %c0_i32_0 : i32, i32
  }
  func.func @transform_2(%arg0: i32) -> (i32, i32) {
    %c0_i32 = arith.constant 0 : i32
    %c0_i32_0 = arith.constant 0 : i32
    %c0_i32_1 = arith.constant 0 : i32
    return %c0_i32, %c0_i32_0 : i32, i32
  }
  func.func @transform_3(%arg0: i32) -> (i32, i32) {
    %c0_i32 = arith.constant 0 : i32
    %c0_i32_0 = arith.constant 0 : i32
    %c0_i32_1 = arith.constant 0 : i32
    return %c0_i32, %c0_i32_0 : i32, i32
  }
  func.func @transform_4(%arg0: i32) -> (i32, i32) {
    %c0_i32 = arith.constant 0 : i32
    %c0_i32_0 = arith.constant 0 : i32
    %c0_i32_1 = arith.constant 0 : i32
    return %c0_i32, %c0_i32_0 : i32, i32
  }
  func.func @transform_5(%arg0: i32) -> (i32, i32) {
    %c0_i32 = arith.constant 0 : i32
    %c0_i32_0 = arith.constant 0 : i32
    %c0_i32_1 = arith.constant 0 : i32
    return %c0_i32, %c0_i32_0 : i32, i32
  }
  func.func @transform_6(%arg0: i32) -> (i32, i32) {
    %c0_i32 = arith.constant 0 : i32
    %c0_i32_0 = arith.constant 0 : i32
    %c0_i32_1 = arith.constant 0 : i32
    return %c0_i32, %c0_i32_0 : i32, i32
  }
  func.func @transform_7(%arg0: i32) -> (i32, i32) {
    %c0_i32 = arith.constant 0 : i32
    %c0_i32_0 = arith.constant 0 : i32
    %c0_i32_1 = arith.constant 0 : i32
    return %c0_i32, %c0_i32_0 : i32, i32
  }
  func.func @transform_8(%arg0: i32) -> (i32, i32) {
    %c0_i32 = arith.constant 0 : i32
    %c0_i32_0 = arith.constant 0 : i32
    %c0_i32_1 = arith.constant 0 : i32
    return %c0_i32, %c0_i32_0 : i32, i32
  }
  func.func @transform_9(%arg0: i32) -> (i32, i32) {
    %c0_i32 = arith.constant 0 : i32
    %c0_i32_0 = arith.constant 0 : i32
    return %arg0, %c0_i32 : i32, i32
  }
  func.func @transform_10(%arg0: i32) -> (i32, i32) {
    %c0_i32 = arith.constant 0 : i32
    %c0_i32_0 = arith.constant 0 : i32
    return %arg0, %c0_i32 : i32, i32
  }
}

</mosaic_0001>

<bundles_post_ra>
// kernel: tpu_custom_call.1
= control target key start
LH: loop header
LB: loop body
LE: loop exit
PB: predicated region body
PF: predicated region fallthrough
CT: control target
= control target key end

     0   :  { %16 = vsyncpa [#allocation3], 0  ;;  %s643_s0 = inlined_call_operand.vmem [shape: f32[8,32], index: 0, kind: input, shape index: {}]   ;;  %s644_s1 = inlined_call_operand.vmem [shape: bf16[32,160], index: 1, kind: input, shape index: {}]   ;;  %s645_s2 = inlined_call_operand.vmem [shape: f32[1,160], index: 2, kind: input, shape index: {}]   ;;  %s646_s3 = inlined_call_operand.vmem [shape: bf16[128,64], index: 3, kind: input, shape index: {}]   ;;  %s647_s4 = inlined_call_operand.vmem [shape: f32[1,64], index: 4, kind: input, shape index: {}]   ;;  %s648_s5 = inlined_call_operand.vmem [shape: bf16[64,64], index: 5, kind: input, shape index: {}]   ;;  %s649_s6 = inlined_call_operand.vmem [shape: f32[1,64], index: 6, kind: input, shape index: {}]   ;;  %s650_s7 = inlined_call_operand.vmem [shape: bf16[64,32], index: 7, kind: input, shape index: {}]   ;;  %s651_s8 = inlined_call_operand.vmem [shape: f32[1,32], index: 8, kind: input, shape index: {}]   ;;  %s652_s9 = inlined_call_operand.hbm [shape: f32[8,32], index: 9, kind: output, shape index: {0}]   ;;  %s653_s10 = inlined_call_operand.hbm [shape: f32[8,32], index: 10, kind: output, shape index: {1}]  }
   0x1   :  { %v336_v0 = vld [vmem:[%s644_s1 + $0x10] sm:$0xf]  ;;  %v413_v1 = vld [vmem:[%s644_s1 + $0x14] sm:$0xf0]  ;;  %v328_v2 = vld [vmem:[%s644_s1] sm:$0xf] }
   0x2   :  { %v337_v3 = vor.u32 %v413_v1, %v336_v0  ;;  %v411_v4 = vld [vmem:[%s644_s1 + $0x4] sm:$0xf0]  ;;  %v421_v5 = vld [vmem:[%s646_s3 + $0x38] sm:$0xff]  ;;  %v37_v7 = vld [vmem:[%s643_s0] sm:$0xff] }
   0x3   :  { %v329_v6 = vor.u32 %v411_v4, %v328_v2  ;;  %171 = vmatpush.bf16.msra.mxu2 %v421_v5  ;;  %v420_v8 = vld [vmem:[%s646_s3 + $0x30] sm:$0xff] }
   0x4   :  { %79 = vmatpush.bf16.msra.mxu0 %v337_v3 }
   0x5   :  { %17 = vsyncpa [#allocation5], 0  ;;  %v38_v9 = vpack.c.bf16 %v37_v7, %v37_v7  ;;  %vm69_vm0 = vcmask 261120   ;;  %v419_v10 = vld [vmem:[%s646_s3 + $0x28] sm:$0xff]  ;;  %v418_v11 = vld [vmem:[%s646_s3 + $0x20] sm:$0xff]  ;;  %vm222_vm1 = vcmask 523264  }
   0x6   :  { %v417_v12 = vld [vmem:[%s646_s3 + $0x18] sm:$0xff]  ;;  %v416_v13 = vld [vmem:[%s646_s3 + $0x10] sm:$0xff]  ;;  %v415_v14 = vld [vmem:[%s646_s3 + $0x8] sm:$0xff]  ;;  %s312_s24 = sshll.u32 %s653_s10, 4  ;;  %s301_s29 = sshll.u32 %s652_s9, 4  ;;  %s313_s24 = int_to_ptr.hbm [resolvable:$true] %s312_s24  ;;  %s302_s29 = int_to_ptr.hbm [resolvable:$true] %s301_s29 }
   0x7   :  { %172 = vmatpush.bf16.msra.mxu2 %v420_v8  ;;  %v414_v15 = vld [vmem:[%s646_s3] sm:$0xff]  ;;  %v425_v16 = vld [vmem:[%s648_s5 + $0x18] sm:$0xff]  ;;  %v424_v17 = vld [vmem:[%s648_s5 + $0x10] sm:$0xff] }
   0x8   :  { %80 = vmatpush.bf16.msra.mxu0 %v329_v6  ;;  %230 = vmatpush.bf16.msra.mxu3 %v425_v16  ;;  %v43_v18 = vld [vmem:[%s645_s2] sm:$0x3]  ;;  %v423_v25 = vld [vmem:[%s648_s5 + $0x8] sm:$0xff]  ;;  %v429_v27 = vld [vmem:[%s650_s7 + $0x18] sm:$0xff] }
   0x9   :  { %v45_v19 = vperm.slane %v43_v18, 0  ;;  %v422_v26 = vld [vmem:[%s648_s5] sm:$0xff]  ;;  %v412_v28 = vld [vmem:[%s644_s1 + $0x14] sm:$0xf]  ;;  %v338_v29 = vld [vmem:[%s644_s1 + $0x18] sm:$0xf0] }
   0xa   :  { %v341_v30 = vor.u32 %v412_v28, %v338_v29  ;;  %v410_v31 = vld [vmem:[%s644_s1 + $0x4] sm:$0xf]  ;;  %v330_v32 = vld [vmem:[%s644_s1 + $0x8] sm:$0xf0]  ;;  %v428_v33 = vld [vmem:[%s650_s7 + $0x10] sm:$0xff]  ;;  %v46_v43 = vperm.slane %v43_v18, 1 }
   0xb   :  { %342 = vmatmul.msk.bf16.vlgmr.msra.gmra.mxu0 %vm69_vm0, %v38_v9  ;;  %173 = vmatpush.bf16.msra.mxu2 %v419_v10  ;;  %v333_v34 = vor.u32 %v410_v31, %v330_v32  ;;  %v427_v35 = vld [vmem:[%s650_s7 + $0x8] sm:$0xff]  ;;  %v432_v36 = vld [vmem:[%s647_s4] ss:$0 sm:$0xff] }
   0xc   :  { %231 = vmatpush.bf16.msra.mxu3 %v424_v17  ;;  %284 = vmatpush.bf16.msrb.mxu0 %v429_v27  ;;  %v426_v42 = vld [vmem:[%s650_s7] sm:$0xff]  ;;  %s487_s7 = smov [#allocation4]  }
   0xd   :  { %92 = vmatpush.bf16.msra.mxu1 %v341_v30  ;;  %v433_v48 = vld [vmem:[%s649_s6] ss:$0 sm:$0xff]  ;;  %s310_s22 = sshll.u32 %s487_s7, 4  ;;  %s488_s6 = smov [#allocation2]   ;;  %s311_s22 = int_to_ptr.vmem [resolvable:$true] %s310_s22 }
   0xe   :  { %v434_v54 = vld [vmem:[%s651_s8] ss:$0 sm:$0xff]  ;;  %s299_s27 = sshll.u32 %s488_s6, 4  ;;  %s300_s27 = int_to_ptr.vmem [resolvable:$true] %s299_s27 }
   0xf   :  { %174 = vmatpush.bf16.msra.mxu2 %v418_v11 }
  0x10   :  { %232 = vmatpush.bf16.msra.mxu3 %v423_v25  ;;  %285 = vmatpush.bf16.msrb.mxu0 %v428_v33 }
  0x11   :  { %93 = vmatpush.bf16.msra.mxu1 %v333_v34 }
  0x13   :  { %175 = vmatpush.bf16.msra.mxu2 %v417_v12 }
  0x14   :  { %233 = vmatpush.bf16.msra.mxu3 %v422_v26  ;;  %343 = vmatmul.msk.bf16.vlgmr.msra.gmra.mxu1 %vm69_vm0, %v38_v9 }
  0x15   :  { %286 = vmatpush.bf16.msrb.mxu0 %v427_v35 }
  0x17   :  { %176 = vmatpush.bf16.msra.mxu2 %v416_v13 }
  0x19   :  { %287 = vmatpush.bf16.msrb.mxu0 %v426_v42 }
  0x1b   :  { %177 = vmatpush.bf16.msra.mxu2 %v415_v14 }
  0x1f   :  { %178 = vmatpush.bf16.msra.mxu2 %v414_v15 }
  0x88   :  { %v82_v20 = vpop.f32.mrf.mxu0 }
  0x89   :  { %v83_v21 = vadd.f32 %v82_v20, %v45_v19 }
  0x8b   :  { %v99_v22 = vmax.f32 %v83_v21, 0.0 }
  0x8d   :  { %v102_v23 = vpack.c.bf16 %v99_v22, %v99_v22 }
  0x8f   :  { %179 = vmatmul.bf16.vlgmr.msra.gmra.mxu2 %v102_v23 }
  0x90   :  { %v84_v24 = vpop.f32.mrf.mxu0 }
  0x91   :  { %v95_v44 = vpop.f32.mrf.mxu1 }
  0x92   :  { %v96_v45 = vadd.f32 %v95_v44, %v46_v43 }
  0x94   :  { %v100_v46 = vmin.f32 %v96_v45, 5.0 }
  0x96   :  { %101 = vst.msk [vmem:[#allocation4] sm:$0xff] %vm69_vm0, %v100_v46 }
  0x97   :  { %315 = dma.vmem_to_hbm [thread:$0]  %s311_s22, 128, %s313_s24, [#allocation5]  }
  0x99   :  { %v97_v47 = vpop.f32.mrf.mxu1 }
 0x112   :  { %v180_v37 = vpop.f32.mrf.mxu2 }
 0x113   :  { %v181_v38 = vadd.f32 %v432_v36, %v180_v37 }
 0x115   :  { %v184_v39 = vmax.f32 %v181_v38, 0.0 }
 0x117   :  { %v185_v40 = vpack.c.bf16 %v184_v39, %v184_v39 }
 0x119   :  { %392 = vmatmul.msk.bf16.vlgmr.msra.gmra.mxu3 %vm222_vm1, %v185_v40 }
 0x11a   :  { %v182_v41 = vpop.f32.mrf.mxu2 }
 0x19c   :  { %v235_v49 = vpop.f32.mrf.mxu3 }
 0x19d   :  { %v236_v50 = vadd.f32 %v433_v48, %v235_v49 }
 0x19f   :  { %v239_v51 = vmax.f32 %v236_v50, 0.0 }
 0x1a1   :  { %v240_v52 = vpack.c.bf16 %v239_v51, %v239_v51 }
 0x1a3   :  { %409 = vmatmul.msk.bf16.vlgmr.msrb.gmra.mxu0 %vm222_vm1, %v240_v52 }
 0x1a4   :  { %v237_v53 = vpop.f32.mrf.mxu3 }
 0x220   :  { %v289_v55 = vpop.f32.mrf.mxu0 }
 0x221   :  { %v290_v56 = vadd.f32 %v434_v54, %v289_v55 }
 0x223   :  { %293 = vst.msk [vmem:[#allocation2] sm:$0xff] %vm69_vm0, %v290_v56 }
 0x224   :  { %304 = dma.vmem_to_hbm [thread:$0]  %s300_s27, 128, %s302_s29, [#allocation3]  }
 0x228   :  { %v291_v57 = vpop.f32.mrf.mxu0 }
 0x229   :  { %483 = dma.done.wait [#allocation3], 128  }
 0x22a   :  { %484 = vsyncadd [#allocation3], 4294967168 }
 0x22b   :  { %485 = dma.done.wait [#allocation5], 128  }
 0x22c   :  { %486 = vsyncadd [#allocation5], 4294967168 }
 0x22d   :  { %324 = vsyncpa [#allocation3], 1 }
 0x22e   :  { %325 = vsyncpa [#allocation5], 1 }

// kernel: tpu_custom_call.1
= control target key start
LH: loop header
LB: loop body
LE: loop exit
PB: predicated region body
PF: predicated region fallthrough
CT: control target
= control target key end

     0   :  { %16 = vsyncpa [#allocation3], 0  ;;  %s643_s0 = inlined_call_operand.vmem [shape: f32[8,32], index: 0, kind: input, shape index: {}]   ;;  %s644_s1 = inlined_call_operand.vmem [shape: bf16[32,160], index: 1, kind: input, shape index: {}]   ;;  %s645_s2 = inlined_call_operand.vmem [shape: f32[1,160], index: 2, kind: input, shape index: {}]   ;;  %s646_s3 = inlined_call_operand.vmem [shape: bf16[128,64], index: 3, kind: input, shape index: {}]   ;;  %s647_s4 = inlined_call_operand.vmem [shape: f32[1,64], index: 4, kind: input, shape index: {}]   ;;  %s648_s5 = inlined_call_operand.vmem [shape: bf16[64,64], index: 5, kind: input, shape index: {}]   ;;  %s649_s6 = inlined_call_operand.vmem [shape: f32[1,64], index: 6, kind: input, shape index: {}]   ;;  %s650_s7 = inlined_call_operand.vmem [shape: bf16[64,32], index: 7, kind: input, shape index: {}]   ;;  %s651_s8 = inlined_call_operand.vmem [shape: f32[1,32], index: 8, kind: input, shape index: {}]   ;;  %s652_s9 = inlined_call_operand.hbm [shape: f32[8,32], index: 9, kind: output, shape index: {0}]   ;;  %s653_s10 = inlined_call_operand.hbm [shape: f32[8,32], index: 10, kind: output, shape index: {1}]  }
   0x1   :  { %v336_v0 = vld [vmem:[%s644_s1 + $0x10] sm:$0xf]  ;;  %v413_v1 = vld [vmem:[%s644_s1 + $0x14] sm:$0xf0]  ;;  %v328_v2 = vld [vmem:[%s644_s1] sm:$0xf] }
   0x2   :  { %v337_v3 = vor.u32 %v413_v1, %v336_v0  ;;  %v411_v4 = vld [vmem:[%s644_s1 + $0x4] sm:$0xf0]  ;;  %v421_v5 = vld [vmem:[%s646_s3 + $0x38] sm:$0xff]  ;;  %v37_v7 = vld [vmem:[%s643_s0] sm:$0xff] }
   0x3   :  { %v329_v6 = vor.u32 %v411_v4, %v328_v2  ;;  %171 = vmatpush.bf16.msra.mxu2 %v421_v5  ;;  %v420_v8 = vld [vmem:[%s646_s3 + $0x30] sm:$0xff] }
   0x4   :  { %79 = vmatpush.bf16.msra.mxu0 %v337_v3 }
   0x5   :  { %17 = vsyncpa [#allocation5], 0  ;;  %v38_v9 = vpack.c.bf16 %v37_v7, %v37_v7  ;;  %vm69_vm0 = vcmask 261120   ;;  %v419_v10 = vld [vmem:[%s646_s3 + $0x28] sm:$0xff]  ;;  %v418_v11 = vld [vmem:[%s646_s3 + $0x20] sm:$0xff]  ;;  %vm222_vm1 = vcmask 523264  }
   0x6   :  { %v417_v12 = vld [vmem:[%s646_s3 + $0x18] sm:$0xff]  ;;  %v416_v13 = vld [vmem:[%s646_s3 + $0x10] sm:$0xff]  ;;  %v415_v14 = vld [vmem:[%s646_s3 + $0x8] sm:$0xff]  ;;  %s312_s24 = sshll.u32 %s653_s10, 4  ;;  %s301_s29 = sshll.u32 %s652_s9, 4  ;;  %s313_s24 = int_to_ptr.hbm [resolvable:$true] %s312_s24  ;;  %s302_s29 = int_to_ptr.hbm [resolvable:$true] %s301_s29 }
   0x7   :  { %172 = vmatpush.bf16.msra.mxu2 %v420_v8  ;;  %v414_v15 = vld [vmem:[%s646_s3] sm:$0xff]  ;;  %v425_v16 = vld [vmem:[%s648_s5 + $0x18] sm:$0xff]  ;;  %v424_v17 = vld [vmem:[%s648_s5 + $0x10] sm:$0xff] }
   0x8   :  { %80 = vmatpush.bf16.msra.mxu0 %v329_v6  ;;  %230 = vmatpush.bf16.msra.mxu3 %v425_v16  ;;  %v43_v18 = vld [vmem:[%s645_s2] sm:$0x3]  ;;  %v423_v25 = vld [vmem:[%s648_s5 + $0x8] sm:$0xff]  ;;  %v429_v27 = vld [vmem:[%s650_s7 + $0x18] sm:$0xff] }
   0x9   :  { %v45_v19 = vperm.slane %v43_v18, 0  ;;  %v422_v26 = vld [vmem:[%s648_s5] sm:$0xff]  ;;  %v412_v28 = vld [vmem:[%s644_s1 + $0x14] sm:$0xf]  ;;  %v338_v29 = vld [vmem:[%s644_s1 + $0x18] sm:$0xf0] }
   0xa   :  { %v341_v30 = vor.u32 %v412_v28, %v338_v29  ;;  %v410_v31 = vld [vmem:[%s644_s1 + $0x4] sm:$0xf]  ;;  %v330_v32 = vld [vmem:[%s644_s1 + $0x8] sm:$0xf0]  ;;  %v428_v33 = vld [vmem:[%s650_s7 + $0x10] sm:$0xff]  ;;  %v46_v43 = vperm.slane %v43_v18, 1 }
   0xb   :  { %342 = vmatmul.msk.bf16.vlgmr.msra.gmra.mxu0 %vm69_vm0, %v38_v9  ;;  %173 = vmatpush.bf16.msra.mxu2 %v419_v10  ;;  %v333_v34 = vor.u32 %v410_v31, %v330_v32  ;;  %v427_v35 = vld [vmem:[%s650_s7 + $0x8] sm:$0xff]  ;;  %v432_v36 = vld [vmem:[%s647_s4] ss:$0 sm:$0xff] }
   0xc   :  { %231 = vmatpush.bf16.msra.mxu3 %v424_v17  ;;  %284 = vmatpush.bf16.msrb.mxu0 %v429_v27  ;;  %v426_v42 = vld [vmem:[%s650_s7] sm:$0xff]  ;;  %s487_s7 = smov [#allocation4]  }
   0xd   :  { %92 = vmatpush.bf16.msra.mxu1 %v341_v30  ;;  %v433_v48 = vld [vmem:[%s649_s6] ss:$0 sm:$0xff]  ;;  %s310_s22 = sshll.u32 %s487_s7, 4  ;;  %s488_s6 = smov [#allocation2]   ;;  %s311_s22 = int_to_ptr.vmem [resolvable:$true] %s310_s22 }
   0xe   :  { %v434_v54 = vld [vmem:[%s651_s8] ss:$0 sm:$0xff]  ;;  %s299_s27 = sshll.u32 %s488_s6, 4  ;;  %s300_s27 = int_to_ptr.vmem [resolvable:$true] %s299_s27 }
   0xf   :  { %174 = vmatpush.bf16.msra.mxu2 %v418_v11 }
  0x10   :  { %232 = vmatpush.bf16.msra.mxu3 %v423_v25  ;;  %285 = vmatpush.bf16.msrb.mxu0 %v428_v33 }
  0x11   :  { %93 = vmatpush.bf16.msra.mxu1 %v333_v34 }
  0x13   :  { %175 = vmatpush.bf16.msra.mxu2 %v417_v12 }
  0x14   :  { %233 = vmatpush.bf16.msra.mxu3 %v422_v26  ;;  %343 = vmatmul.msk.bf16.vlgmr.msra.gmra.mxu1 %vm69_vm0, %v38_v9 }
  0x15   :  { %286 = vmatpush.bf16.msrb.mxu0 %v427_v35 }
  0x17   :  { %176 = vmatpush.bf16.msra.mxu2 %v416_v13 }
  0x19   :  { %287 = vmatpush.bf16.msrb.mxu0 %v426_v42 }
  0x1b   :  { %177 = vmatpush.bf16.msra.mxu2 %v415_v14 }
  0x1f   :  { %178 = vmatpush.bf16.msra.mxu2 %v414_v15 }
  0x88   :  { %v82_v20 = vpop.f32.mrf.mxu0 }
  0x89   :  { %v83_v21 = vadd.f32 %v82_v20, %v45_v19 }
  0x8b   :  { %v99_v22 = vmax.f32 %v83_v21, 0.0 }
  0x8d   :  { %v102_v23 = vpack.c.bf16 %v99_v22, %v99_v22 }
  0x8f   :  { %179 = vmatmul.bf16.vlgmr.msra.gmra.mxu2 %v102_v23 }
  0x90   :  { %v84_v24 = vpop.f32.mrf.mxu0 }
  0x91   :  { %v95_v44 = vpop.f32.mrf.mxu1 }
  0x92   :  { %v96_v45 = vadd.f32 %v95_v44, %v46_v43 }
  0x94   :  { %v100_v46 = vmin.f32 %v96_v45, 5.0 }
  0x96   :  { %101 = vst.msk [vmem:[#allocation4] sm:$0xff] %vm69_vm0, %v100_v46 }
  0x97   :  { %315 = dma.vmem_to_hbm [thread:$0]  %s311_s22, 128, %s313_s24, [#allocation5]  }
  0x99   :  { %v97_v47 = vpop.f32.mrf.mxu1 }
 0x112   :  { %v180_v37 = vpop.f32.mrf.mxu2 }
 0x113   :  { %v181_v38 = vadd.f32 %v432_v36, %v180_v37 }
 0x115   :  { %v184_v39 = vmax.f32 %v181_v38, 0.0 }
 0x117   :  { %v185_v40 = vpack.c.bf16 %v184_v39, %v184_v39 }
 0x119   :  { %392 = vmatmul.msk.bf16.vlgmr.msra.gmra.mxu3 %vm222_vm1, %v185_v40 }
 0x11a   :  { %v182_v41 = vpop.f32.mrf.mxu2 }
 0x19c   :  { %v235_v49 = vpop.f32.mrf.mxu3 }
 0x19d   :  { %v236_v50 = vadd.f32 %v433_v48, %v235_v49 }
 0x19f   :  { %v239_v51 = vmax.f32 %v236_v50, 0.0 }
 0x1a1   :  { %v240_v52 = vpack.c.bf16 %v239_v51, %v239_v51 }
 0x1a3   :  { %409 = vmatmul.msk.bf16.vlgmr.msrb.gmra.mxu0 %vm222_vm1, %v240_v52 }
 0x1a4   :  { %v237_v53 = vpop.f32.mrf.mxu3 }
 0x220   :  { %v289_v55 = vpop.f32.mrf.mxu0 }
 0x221   :  { %v290_v56 = vadd.f32 %v434_v54, %v289_v55 }
 0x223   :  { %293 = vst.msk [vmem:[#allocation2] sm:$0xff] %vm69_vm0, %v290_v56 }
 0x224   :  { %304 = dma.vmem_to_hbm [thread:$0]  %s300_s27, 128, %s302_s29, [#allocation3]  }
 0x228   :  { %v291_v57 = vpop.f32.mrf.mxu0 }
 0x229   :  { %483 = dma.done.wait [#allocation3], 128  }
 0x22a   :  { %484 = vsyncadd [#allocation3], 4294967168 }
 0x22b   :  { %485 = dma.done.wait [#allocation5], 128  }
 0x22c   :  { %486 = vsyncadd [#allocation5], 4294967168 }
 0x22d   :  { %324 = vsyncpa [#allocation3], 1 }
 0x22e   :  { %325 = vsyncpa [#allocation5], 1 }

</bundles_post_ra>
